<compile_context>
chip_gen: v5e
topology: v5e:2x2
jax: 0.10.0
libtpu: 0.0.40
codegen_flags: <defaults>
</compile_context>

<pallas_src>
import functools

import jax
import jax.numpy as jnp
from jax.experimental import pallas as pl
from jax.experimental.pallas import tpu as pltpu

LANES = 512                        # lane-dense last dim (multiple of 128)
BLOCK_ROWS = 1024                  # 1024 x 512 f32 block = 2 MiB
SUBLANES = 8
_EPS_F32 = 1.1920929e-07           # torch.finfo(torch.float32).eps
_FUSE_BYTES = 4 * 1024 * 1024      # fused single-pass path threshold (f32 bytes)
_VMEM_LIMIT = 32 * 1024 * 1024     # raise v5e's 16 MiB default scoped VMEM


def _cdiv(a, b):
    return -(-a // b)


def _round_up(n, m):
    return _cdiv(n, m) * m


# ----------------------------------------------------------------------------
# Fused single-pass kernel: whole tensor in VMEM -> observe + fake-quant + cast.
# ----------------------------------------------------------------------------
def _fused_quant_kernel(x_ref, o_ref, *, qmin, qmax):
    x = x_ref[...].astype(jnp.float32)
    min_val = jnp.minimum(jnp.min(x), 0.0)
    max_val = jnp.maximum(jnp.max(x), 0.0)
    scale = jnp.maximum((max_val - min_val) / (qmax - qmin), _EPS_F32)
    zp = jnp.clip(qmin - jnp.round(min_val / scale), qmin, qmax)
    inv_scale = 1.0 / scale
    q = jnp.clip(jnp.round(x * inv_scale) + zp, qmin, qmax)
    o_ref[...] = ((q - zp) * scale).astype(o_ref.dtype)


def _quantize_fused(x_flat, total, qmin, qmax, out_dtype):
    lanes = 128
    rows = _round_up(_cdiv(total, lanes), SUBLANES)
    padded_total = rows * lanes
    if padded_total != total:
        # Zero padding is safe: min/max are clamped through 0 anyway, and the
        # padded tail is sliced off below.
        x_flat = jnp.pad(x_flat, (0, padded_total - total))
    x2d = x_flat.reshape(rows, lanes)
    out2d = pl.pallas_call(
        functools.partial(_fused_quant_kernel, qmin=float(qmin), qmax=float(qmax)),
        out_shape=jax.ShapeDtypeStruct((rows, lanes), out_dtype),
        compiler_params=pltpu.CompilerParams(vmem_limit_bytes=_VMEM_LIMIT),
    )(x2d)
    return out2d.reshape(-1)[:total]


# ----------------------------------------------------------------------------
# Tiled two-pass pipeline for tensors that do not fit in VMEM.
# Pass 1: per-tile min/max partials (parallel grid, finished with tiny JAX reduce).
# ----------------------------------------------------------------------------
def _minmax_kernel(x_ref, min_ref, max_ref):
    x = x_ref[...].astype(jnp.float32)
    min_ref[0, 0] = jnp.min(x)
    max_ref[0, 0] = jnp.max(x)


# Pass 2: elementwise fake-quant; scale/inv_scale/zp via scalar prefetch (SMEM),
# qmin/qmax baked in as constants, output written directly in target dtype.
def _fakequant_kernel(qparams_ref, x_ref, o_ref, *, qmin, qmax):
    scale = qparams_ref[0]
    inv_scale = qparams_ref[1]
    zp = qparams_ref[2]
    x = x_ref[...].astype(jnp.float32)
    q = jnp.clip(jnp.round(x * inv_scale) + zp, qmin, qmax)
    o_ref[...] = ((q - zp) * scale).astype(o_ref.dtype)


def _quantize_tiled(x_flat, total, qmin, qmax, out_dtype):
    lanes = LANES
    rows = _cdiv(total, lanes)
    block_rows = min(BLOCK_ROWS, _round_up(rows, SUBLANES))
    padded_rows = _round_up(rows, block_rows)
    padded_total = padded_rows * lanes
    if padded_total != total:
        # Zero padding is safe for the observer (min/max clamped through 0);
        # padded rows are sliced off the fake-quant output below.
        x_flat = jnp.pad(x_flat, (0, padded_total - total))
    x2d = x_flat.reshape(padded_rows, lanes)
    num_tiles = padded_rows // block_rows

    # Observer: per-tile partial min/max ("parallel" -> shards across v7x TCs).
    mins, maxs = pl.pallas_call(
        _minmax_kernel,
        out_shape=(jax.ShapeDtypeStruct((num_tiles, 1), jnp.float32),
                   jax.ShapeDtypeStruct((num_tiles, 1), jnp.float32)),
        grid=(num_tiles,),
        in_specs=[pl.BlockSpec((block_rows, lanes), lambda i: (i, 0))],
        out_specs=(pl.BlockSpec((1, 1), lambda i: (i, 0)),
                   pl.BlockSpec((1, 1), lambda i: (i, 0))),
        compiler_params=pltpu.CompilerParams(
            dimension_semantics=("parallel",),
            vmem_limit_bytes=_VMEM_LIMIT),
    )(x2d)

    # Tiny scalar glue in plain JAX (MinMaxObserver affine rule).
    min_val = jnp.minimum(jnp.min(mins), 0.0)
    max_val = jnp.maximum(jnp.max(maxs), 0.0)
    scale = jnp.maximum((max_val - min_val) / (qmax - qmin), _EPS_F32)
    zero_point = jnp.clip(qmin - jnp.round(min_val / scale), qmin, qmax)
    qparams = jnp.stack([scale, 1.0 / scale, zero_point]).astype(jnp.float32)

    # Fake-quant pass, native out dtype written in-kernel.
    out2d = pl.pallas_call(
        functools.partial(_fakequant_kernel, qmin=float(qmin), qmax=float(qmax)),
        out_shape=jax.ShapeDtypeStruct((padded_rows, lanes), out_dtype),
        grid_spec=pltpu.PrefetchScalarGridSpec(
            num_scalar_prefetch=1,
            grid=(num_tiles,),
            in_specs=[pl.BlockSpec((block_rows, lanes), lambda i, qp: (i, 0))],
            out_specs=pl.BlockSpec((block_rows, lanes), lambda i, qp: (i, 0)),
        ),
        compiler_params=pltpu.CompilerParams(
            dimension_semantics=("parallel",),
            vmem_limit_bytes=_VMEM_LIMIT),
    )(qparams, x2d)
    return out2d.reshape(-1)[:total]


# ----------------------------------------------------------------------------
# quantize_activations equivalent (is_moving_avg=False).
# ----------------------------------------------------------------------------
def quantize_activations_pallas(x, qconfig, out_dtype=jnp.float32):
    qmin = float(qconfig.get("qmin", 0))
    qmax = float(qconfig.get("qmax", 255))

    orig_shape = x.shape
    total = 1
    for d in orig_shape:
        total *= int(d)
    x_flat = x.reshape(total)

    if total * 4 <= _FUSE_BYTES:
        out_flat = _quantize_fused(x_flat, total, qmin, qmax, out_dtype)
    else:
        out_flat = _quantize_tiled(x_flat, total, qmin, qmax, out_dtype)
    return out_flat.reshape(orig_shape)


class Quant:
    """JAX/Pallas port of the PyTorch `Quant` activation-quant module."""

    def __init__(self, dtype=jnp.float32, qconfig=None):
        self.qconfig = qconfig
        self.dtype = dtype

    def __call__(self, x):
        if self.qconfig is None:
            return x  # exact PyTorch semantics: pass-through
        # Output dtype is produced inside the kernel (no extra HBM cast pass).
        return quantize_activations_pallas(x, self.qconfig, out_dtype=self.dtype)


if __name__ == "__main__":
    key = jax.random.PRNGKey(0)
    x = jax.random.normal(key, (2, 4, 16, 16), dtype=jnp.float32)  # NCHW

    # Case 1: qconfig=None -> identity.
    ident = Quant(dtype=jnp.float32, qconfig=None)
    y0 = jax.block_until_ready(ident(x))
    assert y0.shape == x.shape and bool(jnp.all(y0 == x))

    # Reference fake-quant in plain JAX (MinMaxObserver affine, quint8-style).
    mn = jnp.minimum(jnp.min(x), 0.0)
    mx = jnp.maximum(jnp.max(x), 0.0)
    scale = jnp.maximum((mx - mn) / 255.0, _EPS_F32)
    zp = jnp.clip(-jnp.round(mn / scale), 0.0, 255.0)
    ref = (jnp.clip(jnp.round(x / scale) + zp, 0.0, 255.0) - zp) * scale

    # Case 2: fused single-pass path (small tensor fits in VMEM).
    quant = Quant(dtype=jnp.float32, qconfig={"qmin": 0, "qmax": 255})
    y1 = jax.block_until_ready(quant(x))
    assert y1.shape == x.shape and y1.dtype == jnp.float32
    assert bool(jnp.max(jnp.abs(y1 - ref)) < 1e-5)

    # Case 3: exercise the tiled two-pass path (used for large tensors).
    y2 = _quantize_tiled(x.reshape(-1), int(x.size), 0.0, 255.0,
                         jnp.float32).reshape(x.shape)
    y2 = jax.block_until_ready(y2)
    assert bool(jnp.max(jnp.abs(y2 - ref)) < 1e-5)

    # Case 4: non-f32 output dtype is produced directly in-kernel.
    quant_bf16 = Quant(dtype=jnp.bfloat16, qconfig={"qmin": 0, "qmax": 255})
    y3 = jax.block_until_ready(quant_bf16(x))
    assert y3.dtype == jnp.bfloat16
    assert bool(jnp.max(jnp.abs(y3.astype(jnp.float32) - ref)) < 2e-2)

    print("KERNEL_OK")
</pallas_src>

<mosaic_0001>
module attributes {stable_mosaic.version = 11 : i64} {
  func.func @_fused_quant_kernel(%arg0: memref<16x128xf32, #tpu.memory_space<vmem>>, %arg1: memref<16x128xf32, #tpu.memory_space<vmem>>) attributes {dimension_semantics = [], scalar_prefetch = 0 : i64, scratch_operands = 0 : i64, tpu.core_type = #tpu.core_type<tc>} {
    %c0 = arith.constant 0 : index
    %c0_0 = arith.constant 0 : index
    %0 = vector.load %arg0[%c0, %c0_0] : memref<16x128xf32, #tpu.memory_space<vmem>>, vector<16x128xf32>
    %1 = vector.shape_cast %0 : vector<16x128xf32> to vector<1x16x128xf32>
    %cst = arith.constant dense<0x7F800000> : vector<1xf32>
    %2 = vector.multi_reduction <minimumf>, %1, %cst [1, 2] : vector<1x16x128xf32> to vector<1xf32>
    %3 = vector.shape_cast %2 : vector<1xf32> to vector<1x1x1xf32>
    %4 = vector.extract %3[0, 0, 0] : f32 from vector<1x1x1xf32>
    %cst_1 = arith.constant 0.000000e+00 : f32
    %5 = arith.minimumf %4, %cst_1 : f32
    %6 = vector.shape_cast %0 : vector<16x128xf32> to vector<1x16x128xf32>
    %cst_2 = arith.constant dense<0xFF800000> : vector<1xf32>
    %7 = vector.multi_reduction <maximumf>, %6, %cst_2 [1, 2] : vector<1x16x128xf32> to vector<1xf32>
    %8 = vector.shape_cast %7 : vector<1xf32> to vector<1x1x1xf32>
    %9 = vector.extract %8[0, 0, 0] : f32 from vector<1x1x1xf32>
    %cst_3 = arith.constant 0.000000e+00 : f32
    %10 = arith.maximumf %9, %cst_3 : f32
    %11 = arith.subf %10, %5 : f32
    %cst_4 = arith.constant 2.550000e+02 : f32
    %12 = arith.divf %11, %cst_4 : f32
    %cst_5 = arith.constant 1.1920929E-7 : f32
    %13 = arith.maximumf %12, %cst_5 : f32
    %14 = arith.divf %5, %13 : f32
    %15 = math.roundeven %14 : f32
    %cst_6 = arith.constant 0.000000e+00 : f32
    %16 = arith.subf %cst_6, %15 : f32
    %cst_7 = arith.constant 0.000000e+00 : f32
    %cst_8 = arith.constant 2.550000e+02 : f32
    %17 = arith.maximumf %cst_7, %16 : f32
    %18 = arith.minimumf %cst_8, %17 : f32
    %cst_9 = arith.constant 1.000000e+00 : f32
    %19 = arith.divf %cst_9, %13 : f32
    %20 = vector.broadcast %19 : f32 to vector<16x128xf32>
    %21 = arith.mulf %0, %20 : vector<16x128xf32>
    %22 = math.roundeven %21 : vector<16x128xf32>
    %23 = vector.broadcast %18 : f32 to vector<16x128xf32>
    %24 = arith.addf %22, %23 : vector<16x128xf32>
    %cst_10 = arith.constant 0.000000e+00 : f32
    %cst_11 = arith.constant 2.550000e+02 : f32
    %25 = vector.broadcast %cst_10 : f32 to vector<16x128xf32>
    %26 = arith.maximumf %25, %24 : vector<16x128xf32>
    %27 = vector.broadcast %cst_11 : f32 to vector<16x128xf32>
    %28 = arith.minimumf %27, %26 : vector<16x128xf32>
    %29 = vector.broadcast %18 : f32 to vector<16x128xf32>
    %30 = arith.subf %28, %29 : vector<16x128xf32>
    %31 = vector.broadcast %13 : f32 to vector<16x128xf32>
    %32 = arith.mulf %30, %31 : vector<16x128xf32>
    %c0_12 = arith.constant 0 : index
    %c0_13 = arith.constant 0 : index
    %33 = vector.load %arg1[%c0_12, %c0_13] : memref<16x128xf32, #tpu.memory_space<vmem>>, vector<16x128xf32>
    tpu.vector_store %arg1[%c0_12, %c0_13], %32 {strides = array<i32>} : memref<16x128xf32, #tpu.memory_space<vmem>>, vector<16x128xf32>,
    return
  }
}

</mosaic_0001>

<bundles_post_ra>
// kernel: tpu_custom_call.1
= control target key start
LH: loop header
LB: loop body
LE: loop exit
PB: predicated region body
PF: predicated region fallthrough
CT: control target
= control target key end

     0   :  { %6 = vsyncpa [#allocation3], 0  ;;  %s272_s0 = inlined_call_operand.hbm [shape: f32[16,128], index: 0, kind: input, shape index: {}]   ;;  %s273_s1 = inlined_call_operand.hbm [shape: f32[16,128], index: 1, kind: output, shape index: {}]  }
   0x1   :  { %7 = vsyncpa [#allocation4], 0  ;;  %s12_s8 = sshll.u32 %s272_s0, 4  ;;  %s230_s9 = smov [#allocation2]   ;;  %s13_s8 = int_to_ptr.hbm [resolvable:$true] %s12_s8 }
   0x2   :  { %s14_s10 = sshll.u32 %s230_s9, 4  ;;  %s231_s11 = smov 128   ;;  %s15_s10 = int_to_ptr.vmem [resolvable:$true] %s14_s10 }
   0x3   :  { %s232_s12 = smov 8  }
   0x4   :  { %20 = dma.hbm_to_vmem [thread:$0]  %s13_s8, 256, %s15_s10, [#allocation3], %s231_s11, %s231_s11, %s232_s12  }
   0x5   :  { %226 = dma.done.wait [#allocation3], 256  }
   0x6   :  { %227 = vsyncadd [#allocation3], 4294967040  ;;  %v25_v0 = vld [vmem:[#allocation2] sm:$0xff]  ;;  %v26_v1 = vld [vmem:[#allocation2 + $0x8] sm:$0xff]  ;;  %v233_v4 = vmov 255.0   ;;  %s234_s13 = smov 0.0  }
   0x7   :  { %v27_v2 = vmin.f32 %v25_v0, %v26_v1  ;;  %v38_v3 = vmax.f32 %v25_v0, %v26_v1  ;;  %174 = vrcp.f32 %v233_v4  ;;  %s235_s20 = smov 1.1920929e-07   ;;  %s236_s3 = smov 255.0  }
   0x8   :  { %s237_s5 = smov [#allocation5]   ;;  %s129_s9 = sshll.u32 %s273_s1, 4  ;;  %s130_s9 = int_to_ptr.hbm [resolvable:$true] %s129_s9 }
   0x9   :  { %28 = vmin.xlane.f32.xlu0 %v27_v2  ;;  %s127_s6 = sshll.u32 %s237_s5, 4  ;;  %s128_s6 = int_to_ptr.vmem [resolvable:$true] %s127_s6 }
   0xd   :  { %v175_v5 = vpop.eup %174 }
   0xe   :  { %v51_v9 = vmul.f32 255.0, %v175_v5  ;;  %vm55_vm0 = vweird.f32 %v175_v5 }
  0x10   :  { %v52_v12 = vsub.f32 1.0, %v51_v9 }
  0x11   :  { %39 = vmax.xlane.f32.xlu0 %v38_v3 }
  0x12   :  { %v53_v18 = vmul.f32 %v175_v5, %v52_v12 }
  0x14   :  { %v54_v21 = vadd.f32 %v175_v5, %v53_v18 }
  0x16   :  { %v56_v24 = vsel %vm55_vm0, %v175_v5, %v54_v21 }
  0x7c   :  { %v29_v6 = vpop.xlane.xlu0 %28 }
  0x7d   :  { %v30_v7 = vrot.slane %v29_v6, 4 }
  0x7f   :  { %v31_v8 = vmin.f32 %v29_v6, %v30_v7 }
  0x81   :  { %v32_v10 = vrot.slane %v31_v8, 2 }
  0x83   :  { %v33_v11 = vmin.f32 %v31_v8, %v32_v10 }
  0x84   :  { %v40_v13 = vpop.xlane.xlu0 %39 }
  0x85   :  { %v41_v14 = vrot.slane %v40_v13, 4  ;;  %v34_v15 = vrot.slane %v33_v11, 1 }
  0x87   :  { %v42_v16 = vmax.f32 %v40_v13, %v41_v14  ;;  %v35_v17 = vmin.f32 %v33_v11, %v34_v15 }
  0x89   :  { %v43_v19 = vrot.slane %v42_v16, 2  ;;  %142 = vpush %v35_v17 }
  0x8b   :  { %v44_v20 = vmax.f32 %v42_v16, %v43_v19 }
  0x8d   :  { %v45_v22 = vrot.slane %v44_v20, 1 }
  0x8f   :  { %v46_v23 = vmax.f32 %v44_v20, %v45_v22 }
  0x91   :  { %144 = vpush %v46_v23 }
  0x92   :  { %146 = vpush %v56_v24 }
  0xba   :  { %s143_s0 = spop %142 }
  0xbb   :  { %s37_s14 = smin.f32 %s234_s13, %s143_s0 }
  0xc2   :  { %s145_s15 = spop %144 }
  0xc3   :  { %s48_s16 = smax.f32 %s234_s13, %s145_s15  ;;  %s147_s17 = spop %146 }
  0xc4   :  { %s49_s18 = ssub.f32 %s48_s16, %s37_s14 }
  0xc6   :  { %s58_s19 = smul.f32 %s147_s17, %s49_s18 }
  0xc8   :  { %s59_s21 = smax.f32 %s235_s20, %s58_s19 }
  0xc9   :  { %v256_v25 = vstv %s59_s21 }
  0xca   :  { %176 = vrcp.f32 %v256_v25  ;;  %v72_v29 = vand.u32 2147483648, %v256_v25  ;;  %v70_v31 = vand.u32 2147483647, %v256_v25  ;;  %vm66_vm2 = vweird.f32 %v256_v25 }
  0xcc   :  { %v73_v33 = vor.u32 1.1754944e-38, %v72_v29  ;;  %vm71_vm4 = vcmp.eq.f32.partialorder %v70_v31, 8.507059e+37 }
  0xd0   :  { %v177_v26 = vpop.eup %176 }
  0xd1   :  { %v62_v27 = vmul.f32 %v177_v26, %v256_v25  ;;  %vm67_vm1 = vweird.f32 %v177_v26 }
  0xd2   :  { %vm68_vm3 = vmor %vm66_vm2, %vm67_vm1 }
  0xd3   :  { %v63_v28 = vsub.f32 1.0, %v62_v27 }
  0xd5   :  { %v64_v30 = vmul.f32 %v177_v26, %v63_v28 }
  0xd7   :  { %v65_v32 = vadd.f32 %v177_v26, %v64_v30 }
  0xd9   :  { %v69_v34 = vsel %vm68_vm3, %v177_v26, %v65_v32 }
  0xda   :  { %v74_v35 = vsel %vm71_vm4, %v73_v33, %v69_v34 }
  0xdb   :  { %148 = vpush %v74_v35 }
 0x10c   :  { %s149_s22 = spop %148 }
 0x10d   :  { %s76_s23 = smul.f32 %s149_s22, %s37_s14  ;;  %v104_v36 = vstv %s149_s22 }
 0x10e   :  { %v105_v37 = vmul.f32 %v104_v36, %v25_v0  ;;  %v106_v38 = vmul.f32 %v104_v36, %v26_v1 }
 0x10f   :  { %s77_s24 = scvt.f32.s32 %s76_s23  ;;  %s82_s25 = sand.u32 2147483647, %s76_s23 }
 0x110   :  { %v152_v39 = vcvt.f32.s32 %v105_v37  ;;  %v160_v40 = vcvt.f32.s32 %v106_v38  ;;  %s80_s27 = sand.u32 2147483648, %s76_s23  ;;  %p83_p0 = scmp.lt.f32.partialorder %s82_s25, 2.1474836e+09  ;;  %v155_v45 = vand.u32 2147483648, %v105_v37  ;;  %v163_v46 = vand.u32 2147483648, %v106_v38 }
 0x111   :  { %s78_s26 = scvt.s32.f32 %s77_s24  ;;  %v150_v47 = vand.u32 2147483647, %v105_v37  ;;  %v158_v48 = vand.u32 2147483647, %v106_v38 }
 0x112   :  { %v153_v41 = vcvt.s32.f32 %v152_v39  ;;  %v161_v42 = vcvt.s32.f32 %v160_v40 }
 0x113   :  { %s79_s28 = sand.u32 2147483647, %s78_s26  ;;  %vm151_vm5 = vcmp.lt.f32.partialorder %v150_v47, 8388608.0  ;;  %vm159_vm6 = vcmp.lt.f32.partialorder %v158_v48, 8388608.0 }
 0x114   :  { %s81_s29 = sor.u32 %s80_s27, %s79_s28  ;;  %v154_v43 = vand.u32 2147483647, %v153_v41  ;;  %v162_v44 = vand.u32 2147483647, %v161_v42 }
 0x115   :  { %s275_s29 = smov (!%p83_p0, %s81_s29), %s76_s23 }
 0x116   :  { %s85_s30 = ssub.f32 0.0, %s275_s29  ;;  %v156_v49 = vor.u32 %v155_v45, %v154_v43  ;;  %v164_v50 = vor.u32 %v163_v46, %v162_v44 }
 0x118   :  { %s86_s2 = smax.f32 %s234_s13, %s85_s30  ;;  %v157_v51 = vsel %vm151_vm5, %v156_v49, %v105_v37  ;;  %v165_v52 = vsel %vm159_vm6, %v164_v50, %v106_v38 }
 0x119   :  { %s87_s4 = smin.f32 %s236_s3, %s86_s2 }
 0x11a   :  { %v109_v53 = vstv %s87_s4 }
 0x11b   :  { %v110_v54 = vadd.f32 %v157_v51, %v109_v53  ;;  %v111_v55 = vadd.f32 %v165_v52, %v109_v53 }
 0x11d   :  { %v112_v56 = vmax.f32 %v110_v54, 0.0  ;;  %v113_v57 = vmax.f32 %v111_v55, 0.0 }
 0x11f   :  { %v114_v58 = vmin.f32 %v112_v56, 255.0  ;;  %v115_v59 = vmin.f32 %v113_v57, 255.0 }
 0x121   :  { %v116_v60 = vsub.f32 %v114_v58, %v109_v53  ;;  %v117_v61 = vsub.f32 %v115_v59, %v109_v53 }
 0x123   :  { %v119_v62 = vmul.f32 %v116_v60, %v256_v25  ;;  %v120_v63 = vmul.f32 %v117_v61, %v256_v25 }
 0x125   :  { %121 = vst [vmem:[#allocation5] sm:$0xff] %v119_v62 }
 0x126   :  { %122 = vst [vmem:[#allocation5 + $0x8] sm:$0xff] %v120_v63 }
 0x127   :  { %135 = dma.vmem_to_hbm [thread:$0]  %s128_s6, 256, %s130_s9, [#allocation4], %s231_s11, %s231_s11, %s232_s12  }
 0x128   :  { %228 = dma.done.wait [#allocation4], 256  }
 0x129   :  { %229 = vsyncadd [#allocation4], 4294967040 }
 0x12a   :  { %140 = vsyncpa [#allocation3], 1 }
 0x12b   :  { %141 = vsyncpa [#allocation4], 1 }

</bundles_post_ra>
